<compile_context>
chip_gen: v7x
topology: tpu7x:2x2x1
jax: 0.10.0
libtpu: 0.0.40
codegen_flags: <defaults>
</compile_context>

<pallas_src>
import functools
import math

import jax
import jax.numpy as jnp
from jax import lax
from jax.experimental import pallas as pl
from jax.experimental.pallas import tpu as pltpu


def _pe_kernel(ids_ref, emb_ref, pe_ref, o_ref, *, scale, ts, s_pad):
    """One grid step = one (TS, E_pad) output tile for (batch b, seq-tile st).

    ids_ref: (B*S_pad,) int32 token ids (scalar-prefetched, SMEM)
    emb_ref: (L, E_pad)  f32 embedding table (VMEM resident, single-buffered)
    pe_ref:  (TS, E_pad) f32 sinusoidal tile
    o_ref:   (TS, E_pad) f32 output tile
    """
    b = pl.program_id(0)
    st = pl.program_id(1)
    base = b * s_pad + st * ts

    # Real gather: one dynamic-index row load per token. Memory-bound, no one-hot matmul.
    def gather_row(s, carry):
        tok = ids_ref[base + s]            # SMEM scalar read
        o_ref[s, :] = emb_ref[tok, :]      # dynamic sublane row load -> row store
        return carry

    lax.fori_loop(0, ts, gather_row, 0, unroll=8)

    # Vectorized: x = embed(x) * sqrt(embed_dim) + pe ; dropout (eval) is identity.
    o_ref[...] = o_ref[...] * scale + pe_ref[...]


def _sinusoidal_table(seq_len, embed_dim, dtype=jnp.float32):
    """Matches the PyTorch buffer (even embed_dim): pe[:,0::2]=sin, pe[:,1::2]=cos.

    Built with an interleaving stack+reshape (no strided .at[::2] scatters).
    """
    pos = jnp.arange(seq_len, dtype=jnp.float32)[:, None]                        # (S, 1)
    wavelen = jnp.exp(
        jnp.arange(0, embed_dim, 2, dtype=jnp.float32) * (-math.log(10000.0) / embed_dim)
    )                                                                            # (ceil(E/2),)
    angle = pos * wavelen[None, :]                                               # (S, E/2)
    pe = jnp.stack([jnp.sin(angle), jnp.cos(angle)], axis=-1).reshape(seq_len, -1)
    return pe[:, :embed_dim].astype(dtype)


@functools.lru_cache(maxsize=16)
def _padded_pe_table(s_pad, embed_dim, e_pad):
    """Cache the (S_pad, E_pad) sinusoidal slab across calls (per-shape)."""
    pe = _sinusoidal_table(s_pad, embed_dim)
    if e_pad != embed_dim:
        pe = jnp.pad(pe, ((0, 0), (0, e_pad - embed_dim)))
    return pe


def sinusoidal_positional_encoding(tokens, emb_table, *, seq_tile=512):
    """tokens: (B, S) int32 in [0, max_seq_len). emb_table: (max_seq_len, E) f32.

    Returns (B, S, E) f32: embedding(tokens) * sqrt(E) + sinusoidal_pe[:S]  (eval-mode dropout).
    """
    B, S = tokens.shape
    L, E = emb_table.shape
    assert E % 2 == 0, "embed_dim must be even (same constraint as the PyTorch module)"
    scale = math.sqrt(E)

    # Lane axis (E) padded to 128 multiples for unmasked stores; seq tiled in TS-row chunks.
    E_pad = pl.cdiv(E, 128) * 128
    TS = min(int(seq_tile), pl.cdiv(S, 8) * 8)
    TS = pl.cdiv(TS, 8) * 8
    S_pad = pl.cdiv(S, TS) * TS
    n_st = S_pad // TS

    emb_f32 = emb_table.astype(jnp.float32)
    emb_p = emb_f32 if E_pad == E else jnp.pad(emb_f32, ((0, 0), (0, E_pad - E)))

    pe_p = _padded_pe_table(S_pad, E, E_pad)

    # Clamp OOB ids (a gather would otherwise read an arbitrary row); pad rows use id 0.
    ids = jnp.clip(tokens.astype(jnp.int32), 0, L - 1)
    if S_pad != S:
        ids = jnp.pad(ids, ((0, 0), (0, S_pad - S)))
    ids = ids.reshape(B * S_pad)  # flat 1-D -> minimal SMEM padding

    kernel = functools.partial(_pe_kernel, scale=scale, ts=TS, s_pad=S_pad)

    # VMEM budget: emb table (1 buffer) + 2x PE tile + 2x out tile, with headroom; cap at 80% of
    # the chip's VMEM (generation-aware: 128 MiB on v5e/v6e, 64 MiB per-TC on v7x).
    block_bytes = (L * E_pad + 2 * TS * E_pad + 2 * TS * E_pad) * 4
    try:
        info = pltpu.get_tpu_info()
        vmem_cap = int(getattr(info, "vmem_capacity_bytes", 128 * 1024 * 1024))
    except Exception:  # pragma: no cover - conservative fallback
        vmem_cap = 64 * 1024 * 1024
    vmem_limit = int(min(max(2 * block_bytes, 16 * 1024 * 1024), int(0.8 * vmem_cap)))

    flops = 2 * B * S_pad * E_pad
    bytes_accessed = 4 * (B * S_pad) + 4 * (L * E_pad + S_pad * E_pad + B * S_pad * E_pad)

    out = pl.pallas_call(
        kernel,
        out_shape=jax.ShapeDtypeStruct((B * S_pad, E_pad), jnp.float32),
        grid_spec=pltpu.PrefetchScalarGridSpec(
            num_scalar_prefetch=1,
            grid=(B, n_st),
            in_specs=[
                # Embedding table: constant index_map, single-buffered, stays resident in VMEM.
                pl.BlockSpec((L, E_pad), lambda b, st, ids: (0, 0),
                             pipeline_mode=pl.Buffered(1)),
                # Sinusoidal tile for this seq-tile.
                pl.BlockSpec((TS, E_pad), lambda b, st, ids: (st, 0)),
            ],
            out_specs=pl.BlockSpec((TS, E_pad), lambda b, st, ids: (b * n_st + st, 0)),
        ),
        compiler_params=pltpu.CompilerParams(
            dimension_semantics=("parallel", "parallel"),
            vmem_limit_bytes=vmem_limit,
        ),
        cost_estimate=pl.CostEstimate(
            flops=flops, transcendentals=0, bytes_accessed=bytes_accessed
        ),
    )(ids, emb_p, pe_p)

    out = out.reshape(B, S_pad, E_pad)
    if S_pad != S or E_pad != E:
        # NOTE: this slice is an extra HBM pass; it is skipped entirely for aligned shapes.
        out = out[:, :S, :E]
    # Dropout (p=0.1) in eval mode is the identity.
    return out


def sinusoidal_positional_encoding_ref(tokens, emb_table):
    """Pure-JAX reference matching the PyTorch module (eval mode)."""
    _, S = tokens.shape
    E = emb_table.shape[1]
    x = emb_table[tokens] * math.sqrt(E)          # nn.Embedding lookup * sqrt(embed_dim)
    pe = _sinusoidal_table(S, E)
    return x + pe[None, :, :]


if __name__ == "__main__":
    # Small shapes consistent with the module: batch=2, seq=8, embed_dim=32, max_seq_len=64
    B, S, E, L = 2, 8, 32, 64
    key = jax.random.PRNGKey(0)
    k_tok, k_emb = jax.random.split(key, 2)

    tokens = jax.random.randint(k_tok, (B, S), 0, L, dtype=jnp.int32)
    emb_table = jax.random.normal(k_emb, (L, E), dtype=jnp.float32)

    out = sinusoidal_positional_encoding(tokens, emb_table)
    out = jax.block_until_ready(out)

    ref = sinusoidal_positional_encoding_ref(tokens, emb_table)
    assert out.shape == (B, S, E)
    assert jnp.allclose(out, ref, atol=1e-5, rtol=1e-5)

    print("KERNEL_OK")
</pallas_src>

<mosaic_0001>
module attributes {stable_mosaic.version = 11 : i64} {
  func.func @_pe_kernel(%arg0: i32, %arg1: i32, %arg2: memref<16xi32, #tpu.memory_space<smem>>, %arg3: memref<64x128xf32, #tpu.memory_space<vmem>>, %arg4: memref<8x128xf32, #tpu.memory_space<vmem>>, %arg5: memref<8x128xf32, #tpu.memory_space<vmem>>) attributes {dimension_semantics = [#tpu.dimension_semantics<parallel>, #tpu.dimension_semantics<parallel>], iteration_bounds = array<i64: 2, 1>, scalar_prefetch = 1 : i64, scratch_operands = 0 : i64, tpu.core_type = #tpu.core_type<tc>, window_params = [{pipeline_mode = #tpu.pipeline_mode<synchronous>, transform_indices = @transform_0, window_bounds = array<i64: 64, 128>}, {transform_indices = @transform_1, window_bounds = array<i64: 8, 128>}, {transform_indices = @transform_2, window_bounds = array<i64: 8, 128>}]} {
    %c8_i32 = arith.constant 8 : i32
    %0 = arith.muli %arg0, %c8_i32 : i32
    %c8_i32_0 = arith.constant 8 : i32
    %1 = arith.muli %arg1, %c8_i32_0 : i32
    %2 = arith.addi %0, %1 : i32
    %c0_i32 = arith.constant 0 : i32
    %3 = arith.addi %2, %c0_i32 : i32
    %4 = arith.index_cast %3 : i32 to index
    %5 = memref.load %arg2[%4] : memref<16xi32, #tpu.memory_space<smem>>
    %6 = arith.index_cast %5 : i32 to index
    %c0 = arith.constant 0 : index
    %7 = vector.load %arg3[%6, %c0] : memref<64x128xf32, #tpu.memory_space<vmem>>, vector<1x128xf32>
    %8 = vector.shape_cast %7 : vector<1x128xf32> to vector<128xf32>
    %9 = arith.index_cast %c0_i32 : i32 to index
    %c0_1 = arith.constant 0 : index
    %10 = vector.load %arg5[%9, %c0_1] : memref<8x128xf32, #tpu.memory_space<vmem>>, vector<1x128xf32>
    %11 = vector.shape_cast %10 : vector<1x128xf32> to vector<128xf32>
    %12 = vector.shape_cast %8 : vector<128xf32> to vector<1x128xf32>
    tpu.vector_store %arg5[%9, %c0_1], %12 {strides = array<i32>} : memref<8x128xf32, #tpu.memory_space<vmem>>, vector<1x128xf32>,
    %c1_i32 = arith.constant 1 : i32
    %13 = arith.addi %2, %c1_i32 : i32
    %14 = arith.index_cast %13 : i32 to index
    %15 = memref.load %arg2[%14] : memref<16xi32, #tpu.memory_space<smem>>
    %16 = arith.index_cast %15 : i32 to index
    %c0_2 = arith.constant 0 : index
    %17 = vector.load %arg3[%16, %c0_2] : memref<64x128xf32, #tpu.memory_space<vmem>>, vector<1x128xf32>
    %18 = vector.shape_cast %17 : vector<1x128xf32> to vector<128xf32>
    %19 = arith.index_cast %c1_i32 : i32 to index
    %c0_3 = arith.constant 0 : index
    %20 = vector.load %arg5[%19, %c0_3] : memref<8x128xf32, #tpu.memory_space<vmem>>, vector<1x128xf32>
    %21 = vector.shape_cast %20 : vector<1x128xf32> to vector<128xf32>
    %22 = vector.shape_cast %18 : vector<128xf32> to vector<1x128xf32>
    tpu.vector_store %arg5[%19, %c0_3], %22 {strides = array<i32>} : memref<8x128xf32, #tpu.memory_space<vmem>>, vector<1x128xf32>,
    %c2_i32 = arith.constant 2 : i32
    %23 = arith.addi %2, %c2_i32 : i32
    %24 = arith.index_cast %23 : i32 to index
    %25 = memref.load %arg2[%24] : memref<16xi32, #tpu.memory_space<smem>>
    %26 = arith.index_cast %25 : i32 to index
    %c0_4 = arith.constant 0 : index
    %27 = vector.load %arg3[%26, %c0_4] : memref<64x128xf32, #tpu.memory_space<vmem>>, vector<1x128xf32>
    %28 = vector.shape_cast %27 : vector<1x128xf32> to vector<128xf32>
    %29 = arith.index_cast %c2_i32 : i32 to index
    %c0_5 = arith.constant 0 : index
    %30 = vector.load %arg5[%29, %c0_5] : memref<8x128xf32, #tpu.memory_space<vmem>>, vector<1x128xf32>
    %31 = vector.shape_cast %30 : vector<1x128xf32> to vector<128xf32>
    %32 = vector.shape_cast %28 : vector<128xf32> to vector<1x128xf32>
    tpu.vector_store %arg5[%29, %c0_5], %32 {strides = array<i32>} : memref<8x128xf32, #tpu.memory_space<vmem>>, vector<1x128xf32>,
    %c3_i32 = arith.constant 3 : i32
    %33 = arith.addi %2, %c3_i32 : i32
    %34 = arith.index_cast %33 : i32 to index
    %35 = memref.load %arg2[%34] : memref<16xi32, #tpu.memory_space<smem>>
    %36 = arith.index_cast %35 : i32 to index
    %c0_6 = arith.constant 0 : index
    %37 = vector.load %arg3[%36, %c0_6] : memref<64x128xf32, #tpu.memory_space<vmem>>, vector<1x128xf32>
    %38 = vector.shape_cast %37 : vector<1x128xf32> to vector<128xf32>
    %39 = arith.index_cast %c3_i32 : i32 to index
    %c0_7 = arith.constant 0 : index
    %40 = vector.load %arg5[%39, %c0_7] : memref<8x128xf32, #tpu.memory_space<vmem>>, vector<1x128xf32>
    %41 = vector.shape_cast %40 : vector<1x128xf32> to vector<128xf32>
    %42 = vector.shape_cast %38 : vector<128xf32> to vector<1x128xf32>
    tpu.vector_store %arg5[%39, %c0_7], %42 {strides = array<i32>} : memref<8x128xf32, #tpu.memory_space<vmem>>, vector<1x128xf32>,
    %c4_i32 = arith.constant 4 : i32
    %43 = arith.addi %2, %c4_i32 : i32
    %44 = arith.index_cast %43 : i32 to index
    %45 = memref.load %arg2[%44] : memref<16xi32, #tpu.memory_space<smem>>
    %46 = arith.index_cast %45 : i32 to index
    %c0_8 = arith.constant 0 : index
    %47 = vector.load %arg3[%46, %c0_8] : memref<64x128xf32, #tpu.memory_space<vmem>>, vector<1x128xf32>
    %48 = vector.shape_cast %47 : vector<1x128xf32> to vector<128xf32>
    %49 = arith.index_cast %c4_i32 : i32 to index
    %c0_9 = arith.constant 0 : index
    %50 = vector.load %arg5[%49, %c0_9] : memref<8x128xf32, #tpu.memory_space<vmem>>, vector<1x128xf32>
    %51 = vector.shape_cast %50 : vector<1x128xf32> to vector<128xf32>
    %52 = vector.shape_cast %48 : vector<128xf32> to vector<1x128xf32>
    tpu.vector_store %arg5[%49, %c0_9], %52 {strides = array<i32>} : memref<8x128xf32, #tpu.memory_space<vmem>>, vector<1x128xf32>,
    %c5_i32 = arith.constant 5 : i32
    %53 = arith.addi %2, %c5_i32 : i32
    %54 = arith.index_cast %53 : i32 to index
    %55 = memref.load %arg2[%54] : memref<16xi32, #tpu.memory_space<smem>>
    %56 = arith.index_cast %55 : i32 to index
    %c0_10 = arith.constant 0 : index
    %57 = vector.load %arg3[%56, %c0_10] : memref<64x128xf32, #tpu.memory_space<vmem>>, vector<1x128xf32>
    %58 = vector.shape_cast %57 : vector<1x128xf32> to vector<128xf32>
    %59 = arith.index_cast %c5_i32 : i32 to index
    %c0_11 = arith.constant 0 : index
    %60 = vector.load %arg5[%59, %c0_11] : memref<8x128xf32, #tpu.memory_space<vmem>>, vector<1x128xf32>
    %61 = vector.shape_cast %60 : vector<1x128xf32> to vector<128xf32>
    %62 = vector.shape_cast %58 : vector<128xf32> to vector<1x128xf32>
    tpu.vector_store %arg5[%59, %c0_11], %62 {strides = array<i32>} : memref<8x128xf32, #tpu.memory_space<vmem>>, vector<1x128xf32>,
    %c6_i32 = arith.constant 6 : i32
    %63 = arith.addi %2, %c6_i32 : i32
    %64 = arith.index_cast %63 : i32 to index
    %65 = memref.load %arg2[%64] : memref<16xi32, #tpu.memory_space<smem>>
    %66 = arith.index_cast %65 : i32 to index
    %c0_12 = arith.constant 0 : index
    %67 = vector.load %arg3[%66, %c0_12] : memref<64x128xf32, #tpu.memory_space<vmem>>, vector<1x128xf32>
    %68 = vector.shape_cast %67 : vector<1x128xf32> to vector<128xf32>
    %69 = arith.index_cast %c6_i32 : i32 to index
    %c0_13 = arith.constant 0 : index
    %70 = vector.load %arg5[%69, %c0_13] : memref<8x128xf32, #tpu.memory_space<vmem>>, vector<1x128xf32>
    %71 = vector.shape_cast %70 : vector<1x128xf32> to vector<128xf32>
    %72 = vector.shape_cast %68 : vector<128xf32> to vector<1x128xf32>
    tpu.vector_store %arg5[%69, %c0_13], %72 {strides = array<i32>} : memref<8x128xf32, #tpu.memory_space<vmem>>, vector<1x128xf32>,
    %c7_i32 = arith.constant 7 : i32
    %73 = arith.addi %2, %c7_i32 : i32
    %74 = arith.index_cast %73 : i32 to index
    %75 = memref.load %arg2[%74] : memref<16xi32, #tpu.memory_space<smem>>
    %76 = arith.index_cast %75 : i32 to index
    %c0_14 = arith.constant 0 : index
    %77 = vector.load %arg3[%76, %c0_14] : memref<64x128xf32, #tpu.memory_space<vmem>>, vector<1x128xf32>
    %78 = vector.shape_cast %77 : vector<1x128xf32> to vector<128xf32>
    %79 = arith.index_cast %c7_i32 : i32 to index
    %c0_15 = arith.constant 0 : index
    %80 = vector.load %arg5[%79, %c0_15] : memref<8x128xf32, #tpu.memory_space<vmem>>, vector<1x128xf32>
    %81 = vector.shape_cast %80 : vector<1x128xf32> to vector<128xf32>
    %82 = vector.shape_cast %78 : vector<128xf32> to vector<1x128xf32>
    tpu.vector_store %arg5[%79, %c0_15], %82 {strides = array<i32>} : memref<8x128xf32, #tpu.memory_space<vmem>>, vector<1x128xf32>,
    %c8_i32_16 = arith.constant 8 : i32
    %c0_17 = arith.constant 0 : index
    %c0_18 = arith.constant 0 : index
    %83 = vector.load %arg5[%c0_17, %c0_18] : memref<8x128xf32, #tpu.memory_space<vmem>>, vector<8x128xf32>
    %cst = arith.constant 5.65685415 : f32
    %84 = vector.broadcast %cst : f32 to vector<8x128xf32>
    %85 = arith.mulf %83, %84 : vector<8x128xf32>
    %c0_19 = arith.constant 0 : index
    %c0_20 = arith.constant 0 : index
    %86 = vector.load %arg4[%c0_19, %c0_20] : memref<8x128xf32, #tpu.memory_space<vmem>>, vector<8x128xf32>
    %87 = arith.addf %85, %86 : vector<8x128xf32>
    %c0_21 = arith.constant 0 : index
    %c0_22 = arith.constant 0 : index
    %88 = vector.load %arg5[%c0_21, %c0_22] : memref<8x128xf32, #tpu.memory_space<vmem>>, vector<8x128xf32>
    tpu.vector_store %arg5[%c0_21, %c0_22], %87 {strides = array<i32>} : memref<8x128xf32, #tpu.memory_space<vmem>>, vector<8x128xf32>,
    return
  }
  func.func @transform_0(%arg0: i32, %arg1: i32, %arg2: memref<16xi32, #tpu.memory_space<smem>>) -> (i32, i32) {
    %c0_i32 = arith.constant 0 : i32
    %c0_i32_0 = arith.constant 0 : i32
    %c0_i32_1 = arith.constant 0 : i32
    return %c0_i32, %c0_i32_0 : i32, i32
  }
  func.func @transform_1(%arg0: i32, %arg1: i32, %arg2: memref<16xi32, #tpu.memory_space<smem>>) -> (i32, i32) {
    %c0_i32 = arith.constant 0 : i32
    %c0_i32_0 = arith.constant 0 : i32
    return %arg1, %c0_i32 : i32, i32
  }
  func.func @transform_2(%arg0: i32, %arg1: i32, %arg2: memref<16xi32, #tpu.memory_space<smem>>) -> (i32, i32) {
    %c1_i32 = arith.constant 1 : i32
    %0 = arith.muli %arg0, %c1_i32 : i32
    %1 = arith.addi %0, %arg1 : i32
    %c0_i32 = arith.constant 0 : i32
    %c0_i32_0 = arith.constant 0 : i32
    return %1, %c0_i32 : i32, i32
  }
}

</mosaic_0001>

<bundles_post_ra>
// kernel: tpu_custom_call.1
= control target key start
LH: loop header
LB: loop body
LE: loop exit
PB: predicated region body
PF: predicated region fallthrough
CT: control target
= control target key end

     0   :  { %s814_s0 = inlined_call_operand.hbm [shape: s32[16], index: 0, kind: input, shape index: {}]   ;;  %s815_s1 = inlined_call_operand.hbm [shape: f32[64,128], index: 1, kind: input, shape index: {}]   ;;  %s816_s2 = inlined_call_operand.hbm [shape: f32[8,128], index: 2, kind: input, shape index: {}]   ;;  %s817_s3 = inlined_call_operand.hbm [shape: f32[16,128], index: 3, kind: output, shape index: {}]  }
   0x1   :  { %s420_s14 = scalar_lea.hbm %s814_s0, 16 }
   0x2   :  { %p421_p0 = scmp.ne.s32.totalorder %s814_s0, %s420_s14  ;;  %p424_p1 = scmp.lt.u32.totalorder %s420_s14, %s814_s0 }
   0x4   :  { %p426_p2 = pnand %p424_p1, %p421_p0 }
   0x6   :  { %429 = shalt.err (!%p426_p2)  }
   0x7   :  { %s576_s19 = smov [#allocation3]  }
   0x8   :  { %9 = dma.hbm_to_smem %s814_s0, 16, %s576_s19, [#allocation2] }
   0x9   :  { %538 = dma.done.wait [#allocation2], 16 }
   0xa   :  { %539 = vsyncadd [#allocation2], 4294967280 }
   0xb   :  { %11 = sfence }
   0xc   :  { %12 = vsyncpa [#allocation5], 0 }
   0xd   :  { %13 = vsyncpa [#allocation8], 0 }
   0xe   :  { %14 = vsyncpa [#allocation6], 0 }
   0xf   :  { %16 = vsyncpa [#allocation6 + $0x1], 0  ;;  %s614_s22 = smov 0   ;;  %s616_s23 = smov 0  }
  0x10   :  { %s618_s24 = smov 0   ;;  %s620_s25 = smov 0  }
  0x11   :  { %s622_s26 = smov 0   ;;  %s624_s27 = smov 0  }
  0x12 LB: > { %s327_s0 = sadd.s32 4294967295, %s574_s27   ;;  %s328_s28 = sadd.s32 4294967294, %s574_s27   ;;  %s574_s27 = sphi %s624_s27, %s22_s27   ;;  %s570_s26 = sphi %s622_s26, %s835_s26   ;;  %s566_s25 = sphi %s620_s25, %s834_s25   ;;  %s562_s24 = sphi %s618_s24, %s833_s24   ;;  %s558_s23 = sphi %s616_s23, %s832_s23   ;;  %s554_s22 = sphi %s614_s22, %s831_s22  }
  0x13   : > { %s34_s29 = sadd.s32 1, %s570_s26  ;;  %s90_s30 = sadd.s32 1, %s562_s24 }
  0x14   : > { %p36_p3 = scmp.ge.s32.totalorder %s34_s29, 2  ;;  %p100_p4 = scmp.ne.s32.totalorder %s562_s24, %s558_s23 }
  0x15   : > { %p101_p5 = scmp.eq.s32.totalorder %s327_s0, 1  ;;  %p106_p6 = scmp.ne.s32.totalorder %s558_s23, %s554_s22 }
  0x16   : > { %s837_s29 = smov (%p36_p3, %s34_s29), 0  ;;  %p107_p8 = scmp.eq.s32.totalorder %s328_s28, 1 }
  0x17   : > { %p654_p7 = por %p101_p5, %p100_p4  ;;  %s87_s5 = ssub.s32 %s570_s26, %s837_s29 }
  0x18   : > { %p329_p9 = scmp.ge.s32.totalorder %s574_s27, 1  ;;  %p88_p10 = scmp.eq.s32.totalorder %s87_s5, 0 }
  0x19   : > { %s822_s4 = scalar_select %p654_p7, 1, 0 }
  0x1a   : > { %p661_p11 = por %p107_p8, %p106_p6  ;;  %p114_p12 = scmp.lt.s32.totalorder %s574_s27, 3 }
  0x1b   : > { %s667_s7 = scalar_select %p88_p10, %s562_s24, %s90_s30  }
  0x1c   : > { %s823_s6 = scalar_select %p661_p11, 1, 0 }
  0x1d   : > { %p669_p13 = pnand %p329_p9, %p114_p12  ;;  %p673_p0 = scmp.eq.s32.totalorder %s327_s0, 0 }
  0x1e   : > { %s577_s10 = smov [#allocation4]   ;;  %s578_s13 = smov [#allocation7]  }
  0x1f   : > { %s824_s8 = scalar_select %p669_p13, 1, 0 }
  0x20   : > { %s825_s9 = scalar_select %p673_p0, 1, 0 }
  0x21   : > { %p351_p1 = pneg %p669_p13  ;;  %s126_s11 = sshll.u32 %s577_s10, 4  ;;  %s127_s11 = int_to_ptr.vmem [resolvable:$true] %s126_s11 }
  0x22   : > { %s142_s14 = sshll.u32 %s578_s13, 4  ;;  %s430_s17 = scalar_lea.hbm %s815_s1, 1024  ;;  %s685_s14 = int_to_ptr.vmem [resolvable:$true] %s142_s14 }
  0x23   : > { %p681_p2 = pnand %p673_p0, %p351_p1  ;;  %p431_p3 = scmp.ne.s32.totalorder %s815_s1, %s430_s17 }
  0x24   : > { %p437_p8 = scmp.lt.u32.totalorder %s430_s17, %s815_s1 }
  0x25   : > { %p432_p4 = pneg %p681_p2 }
  0x27   : > { %p433_p5 = pnand %p432_p4, %p431_p3 }
  0x29   : > { %p434_p6 = pneg %p433_p5 }
  0x2b   : > { %p439_p9 = pnand %p437_p8, %p434_p6 }
  0x2d   : > { %442 = shalt.err (!%p439_p9)
}
  0x2e   : > { %s443_s0 = scalar_lea.vmem %s127_s11, 1024  ;;  %p451_p11 = scmp.lt.s32.totalorder %s127_s11, %s127_s11 }
  0x2f   : > { %p444_p10 = scmp.ne.s32.totalorder %s127_s11, %s443_s0  ;;  %p452_p7 = scmp.lt.s32.totalorder %s443_s0, %s443_s0 }
  0x31   : > { %p446_p12 = pnand %p444_p10, %p432_p4  ;;  %p453_p0 = por %p452_p7, %p451_p11 }
  0x33   : > { %p447_p1 = pneg %p446_p12 }
  0x35   : > { %p454_p13 = pnand %p453_p0, %p447_p1 }
  0x37   : > { %457 = shalt.err (!%p454_p13)
}
  0x38   : > { %s579_s28 = smov 128   ;;  %s580_s30 = smov 8  }
  0x39   : > { %354 = dma.hbm_to_vmem [thread:$0]  (!%p681_p2), %s815_s1, 1024, %s127_s11, [#allocation5], %s579_s28, %s579_s28, %s580_s30  }
  0x3a   : > { %s458_s16 = scalar_lea.hbm %s816_s2, 128 }
  0x3b   : > { %p459_p3 = scmp.ne.s32.totalorder %s816_s2, %s458_s16  ;;  %p465_p13 = scmp.lt.u32.totalorder %s458_s16, %s816_s2 }
  0x3d   : > { %p461_p7 = pnand %p459_p3, %p432_p4 }
  0x3f   : > { %p462_p11 = pneg %p461_p7 }
  0x41   : > { %p467_p0 = pnand %p465_p13, %p462_p11 }
  0x43   : > { %470 = shalt.err (!%p467_p0)
}
  0x44   : > { %s471_s11 = scalar_lea.vmem %s685_s14, 128  ;;  %p479_p9 = scmp.lt.s32.totalorder %s685_s14, %s685_s14 }
  0x45   : > { %p472_p5 = scmp.ne.s32.totalorder %s685_s14, %s471_s11  ;;  %p480_p10 = scmp.lt.s32.totalorder %s471_s11, %s471_s11 }
  0x47   : > { %p474_p6 = pnand %p472_p5, %p432_p4  ;;  %p481_p12 = por %p480_p10, %p479_p9 }
  0x49   : > { %p475_p8 = pneg %p474_p6 }
  0x4b   : > { %p482_p1 = pnand %p481_p12, %p475_p8 }
  0x4d   : > { %485 = shalt.err (!%p482_p1)
}
  0x4e   : > { %357 = dma.hbm_to_vmem [thread:$0]  (!%p681_p2), %s816_s2, 128, %s685_s14, [#allocation8]  }
  0x4f   : > { %p827_p3 = scmp.ne.s32.totalorder %s824_s8, 0 }
  0x50   : > { %p828_p7 = scmp.ne.s32.totalorder (!%p827_p3), %s825_s9, 0 }
  0x51   : > { %155 = sbr.rel (%p827_p3) target bundleno = 135 (0x87), region = 28 }
  0x58   : > { %541 = dma.done.wait (%p828_p7), [#allocation5], 1024  }
  0x59   : > { %543 = vsyncadd (%p828_p7), [#allocation5], 4294966272 }
  0x5a   : > { %545 = dma.done.wait (%p828_p7), [#allocation8], 128  }
  0x5b   : > { %547 = vsyncadd (%p828_p7), [#allocation8], 4294967168  ;;  %s173_s12 = sand.u32 1, %s558_s23   ;;  %s336_s14 = sshll.u32 %s566_s25, 3  ;;  %v221_v9 = vld [vmem:[#allocation7] sm:$0xff] }
  0x5c   : > { %s335_s8 = sshll.u32 %s173_s12, 3  ;;  %s180_s28 = sld [smem:[#allocation3 + %s336_s14]] }
  0x5d   : > { %s184_s30 = sadd.s32 1, %s336_s14  ;;  %s189_s10 = sadd.s32 2, %s336_s14 }
  0x5e   : > { %s185_s5 = sld [smem:[#allocation3 + %s184_s30]]  ;;  %s194_s15 = sadd.s32 3, %s336_s14 }
  0x5f   : > { %s190_s13 = sld [smem:[#allocation3 + %s189_s10]]  ;;  %s199_s17 = sadd.s32 4, %s336_s14 }
  0x60   : > { %s195_s16 = sld [smem:[#allocation3 + %s194_s15]]  ;;  %s204_s19 = sadd.s32 5, %s336_s14 }
  0x61   : > { %s200_s18 = sld [smem:[#allocation3 + %s199_s17]]  ;;  %s209_s11 = sadd.s32 6, %s336_s14 }
  0x62   : > { %s205_s20 = sld [smem:[#allocation3 + %s204_s19]]  ;;  %s181_s9 = scalar_lea.vmem [#allocation4], %s180_s28 }
  0x63   : > { %v182_v0 = vld [vmem:[%s181_s9] sm:$0x1]  ;;  %s214_s21 = sadd.s32 7, %s336_s14  ;;  %s748_s0 = scalar_lea.vmem [#allocation9], %s335_s8 }
  0x64   : > { %183 = vst [vmem:[%s748_s0] sm:$0x1] %v182_v0  ;;  %s210_s30 = sld [smem:[#allocation3 + %s209_s11]]  ;;  %s186_s10 = scalar_lea.vmem [#allocation4], %s185_s5 }
  0x65   : > { %v187_v1 = vld [vmem:[%s186_s10] sm:$0x1]  ;;  %s215_s15 = sld [smem:[#allocation3 + %s214_s21]]  ;;  %s191_s17 = scalar_lea.vmem [#allocation4], %s190_s13 }
  0x66   : > { %188 = vst [vmem:[%s748_s0 + $0x1] sm:$0x1] %v187_v1  ;;  %v192_v2 = vld [vmem:[%s191_s17] sm:$0x1]  ;;  %s196_s14 = scalar_lea.vmem [#allocation4], %s195_s16  ;;  %s338_s16 = sshll.u32 %s566_s25, 7 }
  0x67   : > { %193 = vst [vmem:[%s748_s0 + $0x2] sm:$0x1] %v192_v2  ;;  %v197_v3 = vld [vmem:[%s196_s14] sm:$0x1]  ;;  %s201_s8 = scalar_lea.vmem [#allocation4], %s200_s18  ;;  %s239_s19 = sshll.u32 %s748_s0, 4  ;;  %s766_s19 = int_to_ptr.vmem [resolvable:$true] %s239_s19 }
  0x68   : > { %198 = vst [vmem:[%s748_s0 + $0x3] sm:$0x1] %v197_v3  ;;  %v202_v4 = vld [vmem:[%s201_s8] sm:$0x1]  ;;  %s206_s28 = scalar_lea.vmem [#allocation4], %s205_s20  ;;  %s764_s20 = scalar_lea.hbm %s817_s3, %s338_s16 }
  0x69   : > { %203 = vst [vmem:[%s748_s0 + $0x4] sm:$0x1] %v202_v4  ;;  %v207_v5 = vld [vmem:[%s206_s28] sm:$0x1]  ;;  %s225_s11 = scalar_lea.sflag [#allocation6], %s173_s12  ;;  %s486_s21 = scalar_lea.vmem %s766_s19, 128 }
  0x6a   : > { %208 = vst [vmem:[%s748_s0 + $0x5] sm:$0x1] %v207_v5  ;;  %s211_s5 = scalar_lea.vmem [#allocation4], %s210_s30  ;;  %p487_p2 = scmp.ne.s32.totalorder %s766_s19, %s486_s21 }
  0x6b   : > { %v212_v6 = vld [vmem:[%s211_s5] sm:$0x1]  ;;  %s216_s13 = scalar_lea.vmem [#allocation4], %s215_s15  ;;  %p829_p4 = scmp.ne.s32.totalorder %s822_s4, 0 }
  0x6c   : > { %213 = vst [vmem:[%s748_s0 + $0x6] sm:$0x1] %v212_v6  ;;  %v217_v7 = vld [vmem:[%s216_s13] sm:$0x1]  ;;  %s581_s25 = smov [#allocation9]  }
  0x6d   : > { %218 = vst [vmem:[%s748_s0 + $0x7] sm:$0x1] %v217_v7  ;;  %p488_p11 = pnand %p487_p2, %p829_p4  ;;  %s490_s30 = sshll.u32 %s581_s25, 4  ;;  %s491_s30 = int_to_ptr.vmem [resolvable:$false] %s490_s30 }
  0x6e   : > { %s492_s10 = scalar_lea.vmem %s491_s30, 256  ;;  %p493_p0 = scmp.lt.s32.totalorder %s766_s19, %s491_s30 }
  0x6f   : > { %p489_p13 = pneg %p488_p11  ;;  %p494_p5 = scmp.lt.s32.totalorder %s492_s10, %s486_s21 }
  0x71   : > { %p495_p6 = por %p494_p5, %p493_p0 }
  0x73   : > { %p496_p8 = pnand %p495_p6, %p489_p13 }
  0x74   : > { %v219_v8 = vld [vmem:[%s748_s0] sm:$0xff] }
  0x75   : > { %v220_v10 = vmul.f32 5.656854, %v219_v8 }
  0x77   : > { %v222_v11 = vadd.f32 %v221_v9, %v220_v10 }
  0x79   : > { %223 = vst [vmem:[%s748_s0] sm:$0xff] %v222_v11 }
  0x7a   : > { %499 = shalt.err (!%p496_p8)
}
  0x7b   : > { %s500_s12 = scalar_lea.hbm %s764_s20, 128  ;;  %s504_s17 = scalar_lea.hbm %s817_s3, 256 }
  0x7c   : > { %p501_p9 = scmp.ne.s32.totalorder %s764_s20, %s500_s12  ;;  %p505_p1 = scmp.lt.u32.totalorder %s764_s20, %s817_s3 }
  0x7d   : > { %p506_p3 = scmp.lt.u32.totalorder %s504_s17, %s500_s12  ;;  %p508_p2 = scmp.lt.u32.totalorder %s500_s12, %s764_s20 }
  0x7e   : > { %p502_p10 = pnand %p501_p9, %p829_p4 }
  0x7f   : > { %p507_p7 = por %p506_p3, %p505_p1 }
  0x80   : > { %p503_p12 = pneg %p502_p10 }
  0x81   : > { %p509_p11 = por %p508_p2, %p507_p7 }
  0x83   : > { %p510_p13 = pnand %p509_p11, %p503_p12 }
  0x85   : > { %513 = shalt.err (!%p510_p13)
}
  0x86   : > { %349 = dma.vmem_to_hbm [thread:$0]  (%p829_p4), %s766_s19, 128, %s764_s20, %s225_s11  }
  0x87 PF: > { %p366_p0 = scmp.ge.s32.totalorder %s574_s27, 2  ;;  %s251_s28 = sand.u32 1, %s554_s22  }
  0x88   : > { %p830_p5 = scmp.ne.s32.totalorder %s823_s6, 0  ;;  %s252_s5 = scalar_lea.sflag [#allocation6], %s251_s28 }
  0x8a   : > { %p359_p6 = pnand %p366_p0, %p830_p5 }
  0x8c   : > { %549 = dma.done.wait (!%p359_p6), %s252_s5, 128  }
  0x8d   : > { %551 = vsyncadd (!%p359_p6), %s252_s5, 4294967168  ;;  %s22_s27 = sadd.s32 1, %s574_s27   ;;  %s831_s22 = smov %s558_s23 }
  0x8e   : > { %p19_p8 = scmp.ge.s32.totalorder %s22_s27, 4   ;;  %s832_s23 = smov %s562_s24 }
  0x8f   : > { %s833_s24 = smov %s667_s7  ;;  %s834_s25 = smov %s570_s26 }
  0x90   : > { %s835_s26 = smov %s837_s29  ;;  %21 = sbr.rel (!%p19_p8) target bundleno = 18 (0x12), region = 78 }
  0x97   :  { %257 = vsyncpa [#allocation5], 1 }
  0x98   :  { %259 = vsyncpa [#allocation5 + $0x1], 1 }
  0x99   :  { %260 = vsyncpa [#allocation8], 1 }
  0x9a   :  { %261 = vsyncpa [#allocation6], 1 }
  0x9b   :  { %263 = vsyncpa [#allocation6 + $0x1], 1 }

</bundles_post_ra>
